<compile_context>
chip_gen: v6e
topology: v6e:2x2x1
jax: 0.10.0
libtpu: 0.0.40
codegen_flags: <defaults>
</compile_context>

<pallas_src>
import functools

import numpy as np
import jax
import jax.numpy as jnp
from jax import lax
from jax.experimental import pallas as pl
from jax.experimental.pallas import tpu as pltpu


_VMEM_LIMIT = 40 * 1024 * 1024   # explicit budget: below v7x's 64 MiB physical


def _round_up(x, m):
    return (x + m - 1) // m * m


def _choose_tm(m):
    """Largest row tile dividing m that still leaves >=2 M-tiles (so both v7x
    TensorCores get work); falls back to the largest divisor / full extent."""
    for t in (512, 256, 128, 64, 32, 16, 8):
        if m % t == 0 and m // t >= 2:
            return t
    for t in (512, 256, 128, 64, 32, 16, 8):
        if m % t == 0:
            return t
    return m


def _choose_tile(dim, prefs=(512, 256, 128)):
    """Largest MXU-friendly tile dividing dim (256-lane MXU on v6e/v7x likes
    256/512); otherwise the full extent (legal block size, avoids padding)."""
    for t in prefs:
        if dim % t == 0:
            return t
    return dim


def _pad_rows(a, mp):
    m = a.shape[0]
    return a if mp == m else jnp.pad(a, ((0, mp - m), (0, 0)))


# ---------------------------------------------------------------------------
# Kernels (bf16 MXU inputs, f32 accumulation / epilogue).
# ---------------------------------------------------------------------------
def _mm_bias_act_kernel(x_ref, w_ref, b_ref, o_ref, acc_ref, *, relu):
    """acc += x @ w over the K grid axis; epilogue: + bias (+ ReLU)."""
    k = pl.program_id(2)

    @pl.when(k == 0)
    def _():
        acc_ref[...] = jnp.zeros_like(acc_ref)

    acc_ref[...] += jnp.dot(x_ref[...].astype(jnp.bfloat16), w_ref[...],
                            preferred_element_type=jnp.float32)

    @pl.when(k == pl.num_programs(2) - 1)
    def _():
        y = acc_ref[...] + b_ref[...]
        if relu:
            y = jnp.maximum(y, 0.0)
        o_ref[...] = y.astype(o_ref.dtype)


def _mm_bias_res_relu_kernel(a_ref, w_ref, b_ref, r_ref, o_ref):
    """relu(a @ w + bias + residual)  (full-K block; identity shortcut)."""
    acc = jnp.dot(a_ref[...].astype(jnp.bfloat16), w_ref[...],
                  preferred_element_type=jnp.float32)
    y = acc + b_ref[...] + r_ref[...].astype(jnp.float32)
    o_ref[...] = jnp.maximum(y, 0.0).astype(o_ref.dtype)


def _dual_mm_bias_relu_kernel(a_ref, wa_ref, c_ref, wc_ref, b_ref, o_ref):
    """relu(a @ wa + c @ wc + bias)  (conv3 + projection shortcut fused)."""
    acc = jnp.dot(a_ref[...].astype(jnp.bfloat16), wa_ref[...],
                  preferred_element_type=jnp.float32)
    acc = acc + jnp.dot(c_ref[...].astype(jnp.bfloat16), wc_ref[...],
                        preferred_element_type=jnp.float32)
    o_ref[...] = jnp.maximum(acc + b_ref[...], 0.0).astype(o_ref.dtype)


def _conv3x3_s1_kernel(x_ref, w_ref, b_ref, o_ref, acc_ref, *, h_out, w_pad):
    """3x3 / stride-1 conv on one image: 9 shifted-window matmuls accumulated
    in VMEM (in-kernel im2col).  x_ref is the flattened padded image
    ((h+3)*w_pad, C); output rows ho*w_pad + wo with wo >= W are garbage and
    discarded by the caller."""
    acc_ref[...] = jnp.zeros_like(acc_ref)
    m = h_out * w_pad
    for kh in range(3):
        for kw in range(3):
            off = kh * w_pad + kw                     # static sublane offset
            acc_ref[...] += jnp.dot(x_ref[off:off + m, :], w_ref[kh * 3 + kw],
                                    preferred_element_type=jnp.float32)
    o_ref[...] = jnp.maximum(acc_ref[...] + b_ref[...], 0.0).astype(o_ref.dtype)


# ---------------------------------------------------------------------------
# pallas_call wrappers.
# ---------------------------------------------------------------------------
def fused_matmul(x, w, bias, *, relu, out_dtype):
    """act(x @ w + bias); w is bf16 with the BN scale pre-folded, bias f32."""
    m, k = x.shape
    _, n = w.shape
    mp = _round_up(m, 8)
    xp = _pad_rows(x, mp)
    tm, tn, tk = _choose_tm(mp), _choose_tile(n), _choose_tile(k)
    grid = (mp // tm, n // tn, k // tk)
    out = pl.pallas_call(
        functools.partial(_mm_bias_act_kernel, relu=relu),
        out_shape=jax.ShapeDtypeStruct((mp, n), out_dtype),
        grid_spec=pltpu.PrefetchScalarGridSpec(
            num_scalar_prefetch=0,
            grid=grid,
            in_specs=[
                pl.BlockSpec((tm, tk), lambda i, j, kk: (i, kk)),
                pl.BlockSpec((tk, tn), lambda i, j, kk: (kk, j)),
                pl.BlockSpec((1, tn), lambda i, j, kk: (0, j)),
            ],
            out_specs=pl.BlockSpec((tm, tn), lambda i, j, kk: (i, j)),
            scratch_shapes=[pltpu.VMEM((tm, tn), jnp.float32)],
        ),
        compiler_params=pltpu.CompilerParams(
            dimension_semantics=("parallel", "parallel", "arbitrary"),
            vmem_limit_bytes=_VMEM_LIMIT),
        cost_estimate=pl.CostEstimate(
            flops=2 * mp * n * k,
            transcendentals=0,
            bytes_accessed=(mp * k * x.dtype.itemsize + k * n * 2
                            + mp * n * np.dtype(out_dtype).itemsize)),
    )(xp, w, bias)
    return out if mp == m else out[:m]


def conv3x3_s1_bn_relu(x, w_taps, bias):
    """3x3 / stride-1 / pad-1 conv (+folded-BN bias, ReLU), in-kernel taps.

    x: (N, H, W, C) bf16;  w_taps: (9, C, Co) bf16;  bias: (1, Co) f32.
    Returns (N, H, W, Co) bf16.
    """
    n, h, w, c = x.shape
    co = w_taps.shape[-1]
    wp = w + 2
    # Spatial zero-pad (+1 extra bottom row so the last tap's flat window does
    # not run off the end), then flatten rows.  One small layout pass over the
    # bf16 out1 tensor instead of a 9x im2col expansion through HBM.
    xpad = jnp.pad(x, ((0, 0), (1, 2), (1, 1), (0, 0)))
    flat = xpad.reshape(n, (h + 3) * wp, c)
    m_rows = h * wp
    out_full = pl.pallas_call(
        functools.partial(_conv3x3_s1_kernel, h_out=h, w_pad=wp),
        out_shape=jax.ShapeDtypeStruct((n, m_rows, co), jnp.bfloat16),
        grid_spec=pltpu.PrefetchScalarGridSpec(
            num_scalar_prefetch=0,
            grid=(n,),
            in_specs=[
                pl.BlockSpec((None, (h + 3) * wp, c), lambda i: (i, 0, 0)),
                pl.BlockSpec((9, c, co), lambda i: (0, 0, 0)),
                pl.BlockSpec((1, co), lambda i: (0, 0)),
            ],
            out_specs=pl.BlockSpec((None, m_rows, co), lambda i: (i, 0, 0)),
            scratch_shapes=[pltpu.VMEM((m_rows, co), jnp.float32)],
        ),
        compiler_params=pltpu.CompilerParams(
            dimension_semantics=("parallel",),
            vmem_limit_bytes=_VMEM_LIMIT),
        cost_estimate=pl.CostEstimate(
            flops=2 * n * m_rows * 9 * c * co,
            transcendentals=0,
            bytes_accessed=flat.size * 2 + w_taps.size * 2 + n * m_rows * co * 2),
    )(flat, w_taps, bias)
    # Drop the 2 garbage columns per output row created by the flat-window trick.
    return out_full.reshape(n, h, wp, co)[:, :, :w, :]


def matmul_bias_res_relu(a, w, bias, res, out_dtype=jnp.float32):
    """relu(a @ w + bias + res): conv3 + bn3 + identity shortcut + final relu."""
    m, k = a.shape
    _, n = w.shape
    mp = _round_up(m, 8)
    a, res = _pad_rows(a, mp), _pad_rows(res, mp)
    tm, tn = _choose_tm(mp), _choose_tile(n)
    out = pl.pallas_call(
        _mm_bias_res_relu_kernel,
        out_shape=jax.ShapeDtypeStruct((mp, n), out_dtype),
        grid_spec=pltpu.PrefetchScalarGridSpec(
            num_scalar_prefetch=0,
            grid=(mp // tm, n // tn),
            in_specs=[
                pl.BlockSpec((tm, k), lambda i, j: (i, 0)),
                pl.BlockSpec((k, tn), lambda i, j: (0, j)),
                pl.BlockSpec((1, tn), lambda i, j: (0, j)),
                pl.BlockSpec((tm, tn), lambda i, j: (i, j)),
            ],
            out_specs=pl.BlockSpec((tm, tn), lambda i, j: (i, j)),
        ),
        compiler_params=pltpu.CompilerParams(
            dimension_semantics=("parallel", "parallel"),
            vmem_limit_bytes=_VMEM_LIMIT),
        cost_estimate=pl.CostEstimate(
            flops=2 * mp * n * k,
            transcendentals=0,
            bytes_accessed=(mp * k * a.dtype.itemsize + k * n * 2
                            + mp * n * res.dtype.itemsize
                            + mp * n * np.dtype(out_dtype).itemsize)),
    )(a, w, bias, res)
    return out if mp == m else out[:m]


def dual_matmul_bias_relu(a, wa, c, wc, bias, out_dtype=jnp.float32):
    """relu(a @ wa + c @ wc + bias): conv3 + bn3 + projection shortcut fused."""
    m, ka = a.shape
    _, n = wa.shape
    _, kc = c.shape
    mp = _round_up(m, 8)
    a, c = _pad_rows(a, mp), _pad_rows(c, mp)
    tm, tn = _choose_tm(mp), _choose_tile(n)
    out = pl.pallas_call(
        _dual_mm_bias_relu_kernel,
        out_shape=jax.ShapeDtypeStruct((mp, n), out_dtype),
        grid_spec=pltpu.PrefetchScalarGridSpec(
            num_scalar_prefetch=0,
            grid=(mp // tm, n // tn),
            in_specs=[
                pl.BlockSpec((tm, ka), lambda i, j: (i, 0)),
                pl.BlockSpec((ka, tn), lambda i, j: (0, j)),
                pl.BlockSpec((tm, kc), lambda i, j: (i, 0)),
                pl.BlockSpec((kc, tn), lambda i, j: (0, j)),
                pl.BlockSpec((1, tn), lambda i, j: (0, j)),
            ],
            out_specs=pl.BlockSpec((tm, tn), lambda i, j: (i, j)),
        ),
        compiler_params=pltpu.CompilerParams(
            dimension_semantics=("parallel", "parallel"),
            vmem_limit_bytes=_VMEM_LIMIT),
        cost_estimate=pl.CostEstimate(
            flops=2 * mp * n * (ka + kc),
            transcendentals=0,
            bytes_accessed=(mp * ka * a.dtype.itemsize + ka * n * 2
                            + mp * kc * c.dtype.itemsize + kc * n * 2
                            + mp * n * np.dtype(out_dtype).itemsize)),
    )(a, wa, c, wc, bias)
    return out if mp == m else out[:m]


# ---------------------------------------------------------------------------
# Host-side layout plumbing (no FLOPs).
# ---------------------------------------------------------------------------
def _im2col_3x3(x, stride):
    """x: (N, H, W, C) -> (N*Ho*Wo, 9*C), matching a (9, C, Co) weight
    reshaped to (9*C, Co).  Only used for the stride != 1 downsampling conv."""
    n, h, w, c = x.shape
    xp = jnp.pad(x, ((0, 0), (1, 1), (1, 1), (0, 0)))
    ho = (h - 1) // stride + 1
    wo = (w - 1) // stride + 1
    cols = []
    for kh in range(3):
        for kw in range(3):
            cols.append(xp[:, kh:kh + stride * (ho - 1) + 1:stride,
                           kw:kw + stride * (wo - 1) + 1:stride, :])
    return jnp.concatenate(cols, axis=-1).reshape(n * ho * wo, 9 * c), ho, wo


def _fold_bn(gamma, beta, mean, var, eps=1e-5):
    scale = gamma / jnp.sqrt(var + eps)
    bias = beta - mean * scale
    return scale, bias


def prepare_params(p):
    """One-time parameter prep (outside the jitted forward):
    fold BN scale into the conv weights, cast weights to bf16, keep biases f32."""
    s1, b1 = _fold_bn(*p['bn1'])
    s2, b2 = _fold_bn(*p['bn2'])
    s3, b3 = _fold_bn(*p['bn3'])
    cin2, cout2 = p['w2'].shape[2], p['w2'].shape[3]
    q = {
        'w1': (p['w1'] * s1).astype(jnp.bfloat16),
        'b1': b1.reshape(1, -1).astype(jnp.float32),
        'w2': (p['w2'] * s2).reshape(9, cin2, cout2).astype(jnp.bfloat16),
        'b2': b2.reshape(1, -1).astype(jnp.float32),
        'w3': (p['w3'] * s3).astype(jnp.bfloat16),
        'b3': b3.reshape(1, -1).astype(jnp.float32),
    }
    if 'w_sc' in p:
        ssc, bsc = _fold_bn(*p['bn_sc'])
        q['w_sc'] = (p['w_sc'] * ssc).astype(jnp.bfloat16)
        q['b3sc'] = (b3 + bsc).reshape(1, -1).astype(jnp.float32)
    return q


# ---------------------------------------------------------------------------
# Bottleneck forward (Pallas pipeline), NHWC.
# ---------------------------------------------------------------------------
def bottleneck_pallas(x, q, stride):
    n, h, w, cin = x.shape
    planes = q['w1'].shape[1]
    expansion = q['w3'].shape[1]

    # conv1 (1x1) + bn1 + relu  -> bf16 intermediate.
    out1 = fused_matmul(x.reshape(n * h * w, cin), q['w1'], q['b1'],
                        relu=True, out_dtype=jnp.bfloat16)
    out1 = out1.reshape(n, h, w, planes)

    # conv2 (3x3, pad=1) + bn2 + relu.
    if stride == 1:
        out2 = conv3x3_s1_bn_relu(out1, q['w2'], q['b2'])
        ho, wo = h, w
    else:
        # TODO(synk): stride != 1 still lowers via host-side im2col (bf16); an
        # in-kernel space-to-depth tap decomposition would remove this too.
        cols, ho, wo = _im2col_3x3(out1, stride)
        out2 = fused_matmul(cols, q['w2'].reshape(-1, planes), q['b2'],
                            relu=True, out_dtype=jnp.bfloat16)
    m2 = n * ho * wo
    out2 = out2.reshape(m2, planes)

    # conv3 (1x1) + bn3 + shortcut + final relu, fully fused into one kernel.
    if 'w_sc' in q:
        xs = x[:, ::stride, ::stride, :].reshape(m2, cin)
        out = dual_matmul_bias_relu(out2, q['w3'], xs, q['w_sc'], q['b3sc'])
    else:
        out = matmul_bias_res_relu(out2, q['w3'], q['b3'],
                                   x.reshape(m2, expansion))
    return out.reshape(n, ho, wo, expansion)


# ---------------------------------------------------------------------------
# Pure-JAX f32 reference (lax.conv, HIGHEST precision) mirroring PyTorch.
# ---------------------------------------------------------------------------
def bottleneck_reference(x, p, stride):
    dn = ('NHWC', 'HWIO', 'NHWC')
    hp = lax.Precision.HIGHEST

    def conv(inp, w4, s, pad):
        return lax.conv_general_dilated(inp, w4, (s, s), pad,
                                        dimension_numbers=dn, precision=hp)

    def bn(y, gamma, beta, mean, var, eps=1e-5):
        return (y - mean) * (gamma / jnp.sqrt(var + eps)) + beta

    expansion = p['w3'].shape[1]
    cin = x.shape[-1]

    out = jax.nn.relu(bn(conv(x, p['w1'][None, None], 1, 'VALID'), *p['bn1']))
    out = jax.nn.relu(bn(conv(out, p['w2'], stride, [(1, 1), (1, 1)]), *p['bn2']))
    out = bn(conv(out, p['w3'][None, None], 1, 'VALID'), *p['bn3'])
    if stride != 1 or cin != expansion:
        sc = bn(conv(x, p['w_sc'][None, None], stride, 'VALID'), *p['bn_sc'])
    else:
        sc = x
    return jax.nn.relu(out + sc)


# ---------------------------------------------------------------------------
# Deterministic parameter construction.
# ---------------------------------------------------------------------------
def make_bn(key, c):
    k1, k2, k3, k4 = jax.random.split(key, 4)
    gamma = jax.random.uniform(k1, (c,), jnp.float32, 0.5, 1.5)
    beta = jax.random.normal(k2, (c,), jnp.float32) * 0.1
    mean = jax.random.normal(k3, (c,), jnp.float32) * 0.1
    var = jax.random.uniform(k4, (c,), jnp.float32, 0.5, 1.5)
    return (gamma, beta, mean, var)


def make_params(key, in_planes, planes, stride):
    expansion = 4 * planes
    ks = jax.random.split(key, 8)
    p = {
        'w1': jax.random.normal(ks[0], (in_planes, planes), jnp.float32)
              / np.sqrt(in_planes),
        'w2': jax.random.normal(ks[1], (3, 3, planes, planes), jnp.float32)
              / np.sqrt(9 * planes),
        'w3': jax.random.normal(ks[2], (planes, expansion), jnp.float32)
              / np.sqrt(planes),
        'bn1': make_bn(ks[3], planes),
        'bn2': make_bn(ks[4], planes),
        'bn3': make_bn(ks[5], expansion),
    }
    if stride != 1 or in_planes != expansion:
        p['w_sc'] = (jax.random.normal(ks[6], (in_planes, expansion),
                                       jnp.float32) / np.sqrt(in_planes))
        p['bn_sc'] = make_bn(ks[7], expansion)
    return p


if __name__ == "__main__":
    key = jax.random.PRNGKey(0)
    k_a, k_b, k_pa, k_pb = jax.random.split(key, 4)

    fwd = jax.jit(bottleneck_pallas, static_argnums=(2,))

    # Tolerance reflects bf16 MXU inputs / bf16 intermediates with f32
    # accumulation; the reference is full-f32 HIGHEST-precision lax.conv.
    RTOL = ATOL = 5e-2

    # Config A: downsampling block (stride=2, projection shortcut).
    in_planes_a, planes_a, stride_a = 16, 8, 2
    x_a = jax.random.normal(k_a, (2, 8, 8, in_planes_a), jnp.float32)
    p_a = make_params(k_pa, in_planes_a, planes_a, stride_a)
    q_a = prepare_params(p_a)
    out_a = jax.block_until_ready(fwd(x_a, q_a, stride_a))
    ref_a = bottleneck_reference(x_a, p_a, stride_a)
    np.testing.assert_allclose(np.asarray(out_a), np.asarray(ref_a),
                               rtol=RTOL, atol=ATOL)

    # Config B: identity-shortcut block (stride=1, in_planes == 4*planes).
    in_planes_b, planes_b, stride_b = 32, 8, 1
    x_b = jax.random.normal(k_b, (2, 8, 8, in_planes_b), jnp.float32)
    p_b = make_params(k_pb, in_planes_b, planes_b, stride_b)
    q_b = prepare_params(p_b)
    out_b = jax.block_until_ready(fwd(x_b, q_b, stride_b))
    ref_b = bottleneck_reference(x_b, p_b, stride_b)
    np.testing.assert_allclose(np.asarray(out_b), np.asarray(ref_b),
                               rtol=RTOL, atol=ATOL)

    print("KERNEL_OK")
</pallas_src>

<mosaic_0001>
module attributes {stable_mosaic.version = 11 : i64} {
  func.func @_mm_bias_act_kernel(%arg0: i32, %arg1: i32, %arg2: i32, %arg3: memref<64x16xf32, #tpu.memory_space<vmem>>, %arg4: memref<16x8xbf16, #tpu.memory_space<vmem>>, %arg5: memref<1x8xf32, #tpu.memory_space<vmem>>, %arg6: memref<64x8xbf16, #tpu.memory_space<vmem>>, %arg7: memref<64x8xf32, #tpu.memory_space<vmem>>) attributes {dimension_semantics = [#tpu.dimension_semantics<parallel>, #tpu.dimension_semantics<parallel>, #tpu.dimension_semantics<arbitrary>], iteration_bounds = array<i64: 2, 1, 1>, scalar_prefetch = 0 : i64, scratch_operands = 1 : i64, tpu.core_type = #tpu.core_type<tc>, window_params = [{transform_indices = @transform_0, window_bounds = array<i64: 64, 16>}, {transform_indices = @transform_1, window_bounds = array<i64: 16, 8>}, {transform_indices = @transform_2, window_bounds = array<i64: 1, 8>}, {transform_indices = @transform_3, window_bounds = array<i64: 64, 8>}]} {
    %c0_i32 = arith.constant 0 : i32
    %0 = arith.cmpi eq, %arg2, %c0_i32 : i32
    %1 = arith.extui %0 : i1 to i32
    %c0_i32_0 = arith.constant 0 : i32
    %2 = arith.cmpi ne, %1, %c0_i32_0 : i32
    scf.if %2 {
      %cst_10 = arith.constant 0.000000e+00 : f32
      %13 = vector.broadcast %cst_10 : f32 to vector<64x8xf32>
      %c0_11 = arith.constant 0 : index
      %c0_12 = arith.constant 0 : index
      %14 = vector.load %arg7[%c0_11, %c0_12] : memref<64x8xf32, #tpu.memory_space<vmem>>, vector<64x8xf32>
      tpu.vector_store %arg7[%c0_11, %c0_12], %13 {strides = array<i32>} : memref<64x8xf32, #tpu.memory_space<vmem>>, vector<64x8xf32>,
    } else {
    }
    %c0 = arith.constant 0 : index
    %c0_1 = arith.constant 0 : index
    %3 = vector.load %arg7[%c0, %c0_1] : memref<64x8xf32, #tpu.memory_space<vmem>>, vector<64x8xf32>
    %c0_2 = arith.constant 0 : index
    %c0_3 = arith.constant 0 : index
    %4 = vector.load %arg3[%c0_2, %c0_3] : memref<64x16xf32, #tpu.memory_space<vmem>>, vector<64x16xf32>
    %5 = arith.truncf %4 : vector<64x16xf32> to vector<64x16xbf16>
    %c0_4 = arith.constant 0 : index
    %c0_5 = arith.constant 0 : index
    %6 = vector.load %arg4[%c0_4, %c0_5] : memref<16x8xbf16, #tpu.memory_space<vmem>>, vector<16x8xbf16>
    %cst = arith.constant dense<0.000000e+00> : vector<64x8xf32>
    %7 = tpu.matmul %5, %6, %cst {dimension_numbers = #tpu.dot_dimension_numbers<[1], [0], [0], [1], [0, 0, 1, 1], [], []>} : vector<64x16xbf16>, vector<16x8xbf16>, vector<64x8xf32> -> vector<64x8xf32>
    %8 = arith.addf %3, %7 : vector<64x8xf32>
    %c0_6 = arith.constant 0 : index
    %c0_7 = arith.constant 0 : index
    %9 = vector.load %arg7[%c0_6, %c0_7] : memref<64x8xf32, #tpu.memory_space<vmem>>, vector<64x8xf32>
    tpu.vector_store %arg7[%c0_6, %c0_7], %8 {strides = array<i32>} : memref<64x8xf32, #tpu.memory_space<vmem>>, vector<64x8xf32>,
    %c0_i32_8 = arith.constant 0 : i32
    %10 = arith.cmpi eq, %arg2, %c0_i32_8 : i32
    %11 = arith.extui %10 : i1 to i32
    %c0_i32_9 = arith.constant 0 : i32
    %12 = arith.cmpi ne, %11, %c0_i32_9 : i32
    scf.if %12 {
      %c0_10 = arith.constant 0 : index
      %c0_11 = arith.constant 0 : index
      %13 = vector.load %arg7[%c0_10, %c0_11] : memref<64x8xf32, #tpu.memory_space<vmem>>, vector<64x8xf32>
      %c0_12 = arith.constant 0 : index
      %c0_13 = arith.constant 0 : index
      %14 = vector.load %arg5[%c0_12, %c0_13] : memref<1x8xf32, #tpu.memory_space<vmem>>, vector<1x8xf32>
      %15 = vector.broadcast %14 : vector<1x8xf32> to vector<64x8xf32>
      %16 = arith.addf %13, %15 : vector<64x8xf32>
      %cst_14 = arith.constant 0.000000e+00 : f32
      %17 = vector.broadcast %cst_14 : f32 to vector<64x8xf32>
      %18 = arith.maximumf %16, %17 : vector<64x8xf32>
      %19 = arith.truncf %18 : vector<64x8xf32> to vector<64x8xbf16>
      %c0_15 = arith.constant 0 : index
      %c0_16 = arith.constant 0 : index
      %20 = vector.load %arg6[%c0_15, %c0_16] : memref<64x8xbf16, #tpu.memory_space<vmem>>, vector<64x8xbf16>
      tpu.vector_store %arg6[%c0_15, %c0_16], %19 {strides = array<i32>} : memref<64x8xbf16, #tpu.memory_space<vmem>>, vector<64x8xbf16>,
    } else {
    }
    return
  }
  func.func @transform_0(%arg0: i32, %arg1: i32, %arg2: i32) -> (i32, i32) {
    %c0_i32 = arith.constant 0 : i32
    return %arg0, %arg2 : i32, i32
  }
  func.func @transform_1(%arg0: i32, %arg1: i32, %arg2: i32) -> (i32, i32) {
    %c0_i32 = arith.constant 0 : i32
    return %arg2, %arg1 : i32, i32
  }
  func.func @transform_2(%arg0: i32, %arg1: i32, %arg2: i32) -> (i32, i32) {
    %c0_i32 = arith.constant 0 : i32
    %c0_i32_0 = arith.constant 0 : i32
    return %c0_i32, %arg1 : i32, i32
  }
  func.func @transform_3(%arg0: i32, %arg1: i32, %arg2: i32) -> (i32, i32) {
    %c0_i32 = arith.constant 0 : i32
    return %arg0, %arg1 : i32, i32
  }
}

module attributes {stable_mosaic.version = 11 : i64} {
  func.func @_mm_bias_act_kernel(%arg0: i32, %arg1: i32, %arg2: i32, %arg3: memref<16x72xbf16, #tpu.memory_space<vmem>>, %arg4: memref<72x8xbf16, #tpu.memory_space<vmem>>, %arg5: memref<1x8xf32, #tpu.memory_space<vmem>>, %arg6: memref<16x8xbf16, #tpu.memory_space<vmem>>, %arg7: memref<16x8xf32, #tpu.memory_space<vmem>>) attributes {dimension_semantics = [#tpu.dimension_semantics<parallel>, #tpu.dimension_semantics<parallel>, #tpu.dimension_semantics<arbitrary>], iteration_bounds = array<i64: 2, 1, 1>, scalar_prefetch = 0 : i64, scratch_operands = 1 : i64, tpu.core_type = #tpu.core_type<tc>, window_params = [{transform_indices = @transform_0, window_bounds = array<i64: 16, 72>}, {transform_indices = @transform_1, window_bounds = array<i64: 72, 8>}, {transform_indices = @transform_2, window_bounds = array<i64: 1, 8>}, {transform_indices = @transform_3, window_bounds = array<i64: 16, 8>}]} {
    %c0_i32 = arith.constant 0 : i32
    %0 = arith.cmpi eq, %arg2, %c0_i32 : i32
    %1 = arith.extui %0 : i1 to i32
    %c0_i32_0 = arith.constant 0 : i32
    %2 = arith.cmpi ne, %1, %c0_i32_0 : i32
    scf.if %2 {
      %cst_10 = arith.constant 0.000000e+00 : f32
      %12 = vector.broadcast %cst_10 : f32 to vector<16x8xf32>
      %c0_11 = arith.constant 0 : index
      %c0_12 = arith.constant 0 : index
      %13 = vector.load %arg7[%c0_11, %c0_12] : memref<16x8xf32, #tpu.memory_space<vmem>>, vector<16x8xf32>
      tpu.vector_store %arg7[%c0_11, %c0_12], %12 {strides = array<i32>} : memref<16x8xf32, #tpu.memory_space<vmem>>, vector<16x8xf32>,
    } else {
    }
    %c0 = arith.constant 0 : index
    %c0_1 = arith.constant 0 : index
    %3 = vector.load %arg7[%c0, %c0_1] : memref<16x8xf32, #tpu.memory_space<vmem>>, vector<16x8xf32>
    %c0_2 = arith.constant 0 : index
    %c0_3 = arith.constant 0 : index
    %4 = vector.load %arg3[%c0_2, %c0_3] : memref<16x72xbf16, #tpu.memory_space<vmem>>, vector<16x72xbf16>
    %c0_4 = arith.constant 0 : index
    %c0_5 = arith.constant 0 : index
    %5 = vector.load %arg4[%c0_4, %c0_5] : memref<72x8xbf16, #tpu.memory_space<vmem>>, vector<72x8xbf16>
    %cst = arith.constant dense<0.000000e+00> : vector<16x8xf32>
    %6 = tpu.matmul %4, %5, %cst {dimension_numbers = #tpu.dot_dimension_numbers<[1], [0], [0], [1], [0, 0, 1, 1], [], []>} : vector<16x72xbf16>, vector<72x8xbf16>, vector<16x8xf32> -> vector<16x8xf32>
    %7 = arith.addf %3, %6 : vector<16x8xf32>
    %c0_6 = arith.constant 0 : index
    %c0_7 = arith.constant 0 : index
    %8 = vector.load %arg7[%c0_6, %c0_7] : memref<16x8xf32, #tpu.memory_space<vmem>>, vector<16x8xf32>
    tpu.vector_store %arg7[%c0_6, %c0_7], %7 {strides = array<i32>} : memref<16x8xf32, #tpu.memory_space<vmem>>, vector<16x8xf32>,
    %c0_i32_8 = arith.constant 0 : i32
    %9 = arith.cmpi eq, %arg2, %c0_i32_8 : i32
    %10 = arith.extui %9 : i1 to i32
    %c0_i32_9 = arith.constant 0 : i32
    %11 = arith.cmpi ne, %10, %c0_i32_9 : i32
    scf.if %11 {
      %c0_10 = arith.constant 0 : index
      %c0_11 = arith.constant 0 : index
      %12 = vector.load %arg7[%c0_10, %c0_11] : memref<16x8xf32, #tpu.memory_space<vmem>>, vector<16x8xf32>
      %c0_12 = arith.constant 0 : index
      %c0_13 = arith.constant 0 : index
      %13 = vector.load %arg5[%c0_12, %c0_13] : memref<1x8xf32, #tpu.memory_space<vmem>>, vector<1x8xf32>
      %14 = vector.broadcast %13 : vector<1x8xf32> to vector<16x8xf32>
      %15 = arith.addf %12, %14 : vector<16x8xf32>
      %cst_14 = arith.constant 0.000000e+00 : f32
      %16 = vector.broadcast %cst_14 : f32 to vector<16x8xf32>
      %17 = arith.maximumf %15, %16 : vector<16x8xf32>
      %18 = arith.truncf %17 : vector<16x8xf32> to vector<16x8xbf16>
      %c0_15 = arith.constant 0 : index
      %c0_16 = arith.constant 0 : index
      %19 = vector.load %arg6[%c0_15, %c0_16] : memref<16x8xbf16, #tpu.memory_space<vmem>>, vector<16x8xbf16>
      tpu.vector_store %arg6[%c0_15, %c0_16], %18 {strides = array<i32>} : memref<16x8xbf16, #tpu.memory_space<vmem>>, vector<16x8xbf16>,
    } else {
    }
    return
  }
  func.func @transform_0(%arg0: i32, %arg1: i32, %arg2: i32) -> (i32, i32) {
    %c0_i32 = arith.constant 0 : i32
    return %arg0, %arg2 : i32, i32
  }
  func.func @transform_1(%arg0: i32, %arg1: i32, %arg2: i32) -> (i32, i32) {
    %c0_i32 = arith.constant 0 : i32
    return %arg2, %arg1 : i32, i32
  }
  func.func @transform_2(%arg0: i32, %arg1: i32, %arg2: i32) -> (i32, i32) {
    %c0_i32 = arith.constant 0 : i32
    %c0_i32_0 = arith.constant 0 : i32
    return %c0_i32, %arg1 : i32, i32
  }
  func.func @transform_3(%arg0: i32, %arg1: i32, %arg2: i32) -> (i32, i32) {
    %c0_i32 = arith.constant 0 : i32
    return %arg0, %arg1 : i32, i32
  }
}

module attributes {stable_mosaic.version = 11 : i64} {
  func.func @_dual_mm_bias_relu_kernel(%arg0: i32, %arg1: i32, %arg2: memref<16x8xbf16, #tpu.memory_space<vmem>>, %arg3: memref<8x32xbf16, #tpu.memory_space<vmem>>, %arg4: memref<16x16xf32, #tpu.memory_space<vmem>>, %arg5: memref<16x32xbf16, #tpu.memory_space<vmem>>, %arg6: memref<1x32xf32, #tpu.memory_space<vmem>>, %arg7: memref<16x32xf32, #tpu.memory_space<vmem>>) attributes {dimension_semantics = [#tpu.dimension_semantics<parallel>, #tpu.dimension_semantics<parallel>], iteration_bounds = array<i64: 2, 1>, scalar_prefetch = 0 : i64, scratch_operands = 0 : i64, tpu.core_type = #tpu.core_type<tc>, window_params = [{transform_indices = @transform_0, window_bounds = array<i64: 16, 8>}, {transform_indices = @transform_1, window_bounds = array<i64: 8, 32>}, {transform_indices = @transform_2, window_bounds = array<i64: 16, 16>}, {transform_indices = @transform_3, window_bounds = array<i64: 16, 32>}, {transform_indices = @transform_4, window_bounds = array<i64: 1, 32>}, {transform_indices = @transform_5, window_bounds = array<i64: 16, 32>}]} {
    %c0 = arith.constant 0 : index
    %c0_0 = arith.constant 0 : index
    %0 = vector.load %arg2[%c0, %c0_0] : memref<16x8xbf16, #tpu.memory_space<vmem>>, vector<16x8xbf16>
    %c0_1 = arith.constant 0 : index
    %c0_2 = arith.constant 0 : index
    %1 = vector.load %arg3[%c0_1, %c0_2] : memref<8x32xbf16, #tpu.memory_space<vmem>>, vector<8x32xbf16>
    %cst = arith.constant dense<0.000000e+00> : vector<16x32xf32>
    %2 = tpu.matmul %0, %1, %cst {dimension_numbers = #tpu.dot_dimension_numbers<[1], [0], [0], [1], [0, 0, 1, 1], [], []>} : vector<16x8xbf16>, vector<8x32xbf16>, vector<16x32xf32> -> vector<16x32xf32>
    %c0_3 = arith.constant 0 : index
    %c0_4 = arith.constant 0 : index
    %3 = vector.load %arg4[%c0_3, %c0_4] : memref<16x16xf32, #tpu.memory_space<vmem>>, vector<16x16xf32>
    %4 = arith.truncf %3 : vector<16x16xf32> to vector<16x16xbf16>
    %c0_5 = arith.constant 0 : index
    %c0_6 = arith.constant 0 : index
    %5 = vector.load %arg5[%c0_5, %c0_6] : memref<16x32xbf16, #tpu.memory_space<vmem>>, vector<16x32xbf16>
    %cst_7 = arith.constant dense<0.000000e+00> : vector<16x32xf32>
    %6 = tpu.matmul %4, %5, %cst_7 {dimension_numbers = #tpu.dot_dimension_numbers<[1], [0], [0], [1], [0, 0, 1, 1], [], []>} : vector<16x16xbf16>, vector<16x32xbf16>, vector<16x32xf32> -> vector<16x32xf32>
    %7 = arith.addf %2, %6 : vector<16x32xf32>
    %c0_8 = arith.constant 0 : index
    %c0_9 = arith.constant 0 : index
    %8 = vector.load %arg6[%c0_8, %c0_9] : memref<1x32xf32, #tpu.memory_space<vmem>>, vector<1x32xf32>
    %9 = vector.broadcast %8 : vector<1x32xf32> to vector<16x32xf32>
    %10 = arith.addf %7, %9 : vector<16x32xf32>
    %cst_10 = arith.constant 0.000000e+00 : f32
    %11 = vector.broadcast %cst_10 : f32 to vector<16x32xf32>
    %12 = arith.maximumf %10, %11 : vector<16x32xf32>
    %c0_11 = arith.constant 0 : index
    %c0_12 = arith.constant 0 : index
    %13 = vector.load %arg7[%c0_11, %c0_12] : memref<16x32xf32, #tpu.memory_space<vmem>>, vector<16x32xf32>
    tpu.vector_store %arg7[%c0_11, %c0_12], %12 {strides = array<i32>} : memref<16x32xf32, #tpu.memory_space<vmem>>, vector<16x32xf32>,
    return
  }
  func.func @transform_0(%arg0: i32, %arg1: i32) -> (i32, i32) {
    %c0_i32 = arith.constant 0 : i32
    %c0_i32_0 = arith.constant 0 : i32
    return %arg0, %c0_i32 : i32, i32
  }
  func.func @transform_1(%arg0: i32, %arg1: i32) -> (i32, i32) {
    %c0_i32 = arith.constant 0 : i32
    %c0_i32_0 = arith.constant 0 : i32
    return %c0_i32, %arg1 : i32, i32
  }
  func.func @transform_2(%arg0: i32, %arg1: i32) -> (i32, i32) {
    %c0_i32 = arith.constant 0 : i32
    %c0_i32_0 = arith.constant 0 : i32
    return %arg0, %c0_i32 : i32, i32
  }
  func.func @transform_3(%arg0: i32, %arg1: i32) -> (i32, i32) {
    %c0_i32 = arith.constant 0 : i32
    %c0_i32_0 = arith.constant 0 : i32
    return %c0_i32, %arg1 : i32, i32
  }
  func.func @transform_4(%arg0: i32, %arg1: i32) -> (i32, i32) {
    %c0_i32 = arith.constant 0 : i32
    %c0_i32_0 = arith.constant 0 : i32
    return %c0_i32, %arg1 : i32, i32
  }
  func.func @transform_5(%arg0: i32, %arg1: i32) -> (i32, i32) {
    %c0_i32 = arith.constant 0 : i32
    return %arg0, %arg1 : i32, i32
  }
}

</mosaic_0001>

<bundles_post_ra>
// kernel: bottleneck_pallas.3
= control target key start
LH: loop header
LB: loop body
LE: loop exit
PB: predicated region body
PF: predicated region fallthrough
CT: control target
= control target key end

     0   :  { %8 = vsyncpa [#allocation4], 0  ;;  %s966_s0 = inlined_call_operand.hbm [shape: f32[128,16], index: 0, kind: input, shape index: {}]   ;;  %s967_s1 = inlined_call_operand.vmem [shape: bf16[16,8], index: 1, kind: input, shape index: {}]   ;;  %s968_s2 = inlined_call_operand.vmem [shape: f32[1,8], index: 2, kind: input, shape index: {}]   ;;  %s969_s3 = inlined_call_operand.vmem [shape: bf16[128,8], index: 3, kind: output, shape index: {}]  }
   0x1   :  { %10 = vsyncpa [#allocation4 + $0x1], 0  ;;  %s821_s12 = smov 0   ;;  %s823_s13 = smov 0  }
   0x2   :  { %s825_s14 = smov 0   ;;  %s827_s15 = smov 0  }
   0x3   :  { %s829_s16 = smov 0   ;;  %s831_s17 = smov 0  }
   0x4 LB: > { %s603_s18 = sadd.s32 4294967295, %s795_s17   ;;  %s35_s19 = sadd.s32 1, %s791_s16  ;;  %s795_s17 = sphi %s831_s17, %s16_s17   ;;  %s791_s16 = sphi %s829_s16, %s978_s16   ;;  %s787_s15 = sphi %s827_s15, %s977_s15   ;;  %s783_s14 = sphi %s825_s14, %s976_s14   ;;  %s779_s13 = sphi %s823_s13, %s975_s13   ;;  %s775_s12 = sphi %s821_s12, %s974_s12  }
   0x5   : > { %p37_p0 = scmp.ge.s32.totalorder %s35_s19, 2  ;;  %s44_s20 = sadd.s32 1, %s783_s14 }
   0x6   : > { %p51_p1 = scmp.ne.s32.totalorder %s783_s14, %s779_s13  ;;  %p52_p2 = scmp.eq.s32.totalorder %s795_s17, 0 }
   0x7   : > { %s980_s19 = smov (%p37_p0, %s35_s19), 0  ;;  %p57_p4 = scmp.ne.s32.totalorder %s779_s13, %s775_s12 }
   0x8   : > { %p857_p3 = por %p52_p2, %p51_p1  ;;  %s39_s22 = ssub.s32 %s791_s16, %s980_s19 }
   0x9   : > { %p58_p5 = scmp.eq.s32.totalorder %s603_s18, 0  ;;  %p42_p6 = scmp.eq.s32.totalorder %s39_s22, 0 }
   0xa   : > { %p664_p8 = scmp.lt.s32.totalorder %s795_s17, 2  ;;  %s181_s25 = sand.u32 1, %s783_s14  }
   0xb   : > { %p864_p7 = por %p58_p5, %p57_p4  ;;  %s632_s26 = sshll.u32 %s791_s16, 10 }
   0xc   : > { %s870_s24 = scalar_select %p42_p6, %s783_s14, %s44_s20  }
   0xd   : > { %s609_s27 = sshll.u32 %s181_s25, 6  ;;  %s192_s30 = scalar_lea.hbm %s966_s0, %s632_s26 }
   0xe   : > { %s185_s4 = scalar_lea.vmem [#allocation3], %s609_s27  ;;  %p879_p9 = pnand %p664_p8, %p857_p3 }
   0xf   : > { %s193_s5 = sshll.u32 %s185_s4, 4  ;;  %s182_s7 = scalar_lea.sflag [#allocation4], %s181_s25  ;;  %s194_s5 = int_to_ptr.vmem [resolvable:$true] %s193_s5 }
  0x10   : > { %p719_p10 = pneg %p879_p9  ;;  %s730_s8 = scalar_lea.vmem %s194_s5, 1024 }
  0x11   : > { %p731_p11 = scmp.ne.s32.totalorder %s194_s5, %s730_s8  ;;  %s797_s9 = smov [#allocation3]  }
  0x12   : > { %s735_s10 = sshll.u32 %s797_s9, 4  ;;  %s736_s10 = int_to_ptr.vmem [resolvable:$false] %s735_s10 }
  0x13   : > { %p733_p12 = pnand %p731_p11, %p719_p10  ;;  %s737_s11 = scalar_lea.vmem %s736_s10, 2048 }
  0x14   : > { %p738_p0 = scmp.lt.s32.totalorder %s194_s5, %s736_s10  ;;  %p739_p1 = scmp.lt.s32.totalorder %s737_s11, %s730_s8 }
  0x15   : > { %p734_p13 = pneg %p733_p12 }
  0x16   : > { %p740_p2 = por %p739_p1, %p738_p0 }
  0x18   : > { %p741_p3 = pnand %p740_p2, %p734_p13 }
  0x1a   : > { %744 = shalt.err (!%p741_p3)
}
  0x1b   : > { %s798_s12 = smov 128   ;;  %s799_s18 = smov 8  }
  0x1c   : > { %663 = dma.hbm_to_vmem [thread:$0]  (!%p879_p9), %s192_s30, 1024, %s194_s5, %s182_s7, %s798_s12, %s798_s12, %s799_s18  }
  0x1d   : > { %p612_p4 = scmp.ge.s32.totalorder %s795_s17, 1  ;;  %p201_p5 = scmp.lt.s32.totalorder %s795_s17, 3 }
  0x1f   : > { %p202_p6 = pnand %p612_p4, %p201_p5 }
  0x20   : > { %s207_s20 = sand.u32 (!%p202_p6), 1, %s779_s13  }
  0x21   : > { %205 = sbr.rel (%p202_p6) target bundleno = 262 (0x106), region = 32  ;;  %s613_s21 = sshll.u32 (!%p202_p6), %s207_s20, 6 }
  0x22   : > { %s208_s22 = scalar_lea.sflag (!%p202_p6), [#allocation4], %s207_s20  ;;  %s211_s25 = scalar_lea.vmem (!%p202_p6), [#allocation3], %s613_s21 }
  0x26   : > { %770 = dma.done.wait (%p864_p7), %s208_s22, 1024  }
  0x27   : > { %772 = vsyncadd (%p864_p7), %s208_s22, 4294966272  ;;  %vm275_vm0 = vcmask 64512   ;;  %v800_v0 = vmov 0.0   ;;  %v716_v1 = vld [vmem:[%s967_s1] sm:$0xff]   ;;  %v293_v3 = vld [vmem:[%s211_s25 + $0x8] sm:$0xff]  ;;  %vm312_vm1 = vcmask 130048  }
  0x28   : > { %278 = vst.msk [vmem:[#allocation2 + $0x10] sm:$0xff] %vm275_vm0, %v800_v0  ;;  %276 = vst.msk [vmem:[#allocation2] sm:$0xff] %vm275_vm0, %v800_v0  ;;  %v292_v2 = vld [vmem:[%s211_s25] sm:$0xff]  ;;  %646 = vmatprep.subr.bf16.mxu0 %v716_v1  ;;  %656 = vmatprep.subr.bf16.mxu1 %v716_v1  ;;  %v297_v6 = vld [vmem:[%s211_s25 + $0x28] sm:$0xff]  ;;  %s614_s27 = sshll.u32 %s787_s15, 3  ;;  %vm473_vm2 = vcmask 60416  }
  0x29   : > { %277 = vst.msk [vmem:[#allocation2 + $0x8] sm:$0xff] %vm275_vm0, %v800_v0  ;;  %279 = vst.msk [vmem:[#allocation2 + $0x18] sm:$0xff] %vm275_vm0, %v800_v0  ;;  %v296_v4 = vld [vmem:[%s211_s25 + $0x20] sm:$0xff]  ;;  %v300_v5 = vpack.c.bf16 %v293_v3, %v292_v2  ;;  %v294_v7 = vld [vmem:[%s211_s25 + $0x10] sm:$0xff]  ;;  %647 = vmatpush3.bf16.msra.mxu0 %v716_v1  ;;  %657 = vmatpush3.bf16.msra.mxu1 %v716_v1  ;;  %p910_p7 = scmp.lt.s32.totalorder %s614_s27, 15 }
  0x2a   : > { %280 = vst.msk [vmem:[#allocation2 + $0x20] sm:$0xff] %vm275_vm0, %v800_v0  ;;  %281 = vst.msk [vmem:[#allocation2 + $0x28] sm:$0xff] %vm275_vm0, %v800_v0  ;;  %v295_v8 = vld [vmem:[%s211_s25 + $0x18] sm:$0xff]  ;;  %v302_v9 = vpack.c.bf16 %v297_v6, %v296_v4  ;;  %v298_v11 = vld [vmem:[%s211_s25 + $0x30] sm:$0xff] }
  0x2b   : > { %282 = vst.msk [vmem:[#allocation2 + $0x30] sm:$0xff] %vm275_vm0, %v800_v0  ;;  %283 = vst.msk [vmem:[#allocation2 + $0x38] sm:$0xff] %vm275_vm0, %v800_v0  ;;  %v301_v10 = vpack.c.bf16 %v295_v8, %v294_v7  ;;  %v299_v12 = vld [vmem:[%s211_s25 + $0x38] sm:$0xff]  ;;  %648 = vmatprep.mubr.msk.bf16.mxu0 %vm312_vm1, %v300_v5  ;;  %s982_s27 = smov (!%p910_p7, %s614_s27), 15  ;;  %v621_v38 = vld [vmem:[%s968_s2] ss:$0 sm:$0xff] }
  0x2c   : > { %v303_v13 = vpack.c.bf16 %v299_v12, %v298_v11  ;;  %652 = vmatprep.mubr.msk.bf16.mxu1 %vm312_vm1, %v302_v9  ;;  %s615_s30 = sshll.u32 %s982_s27, 2 }
  0x2d   : > { %649 = vmatmul.mubr.msk.bf16.vlgmr.msra.gmra.mxu0 %vm312_vm1, %v301_v10  ;;  %s930_s6 = scalar_lea.vmem %s969_s3, %s615_s30 }
  0x2e   : > { %653 = vmatmul.mubr.msk.bf16.vlgmr.msra.gmra.mxu1 %vm312_vm1, %v303_v13 }
  0x2f   : > { %v286_v14 = vld [vmem:[#allocation2 + $0x10] sm:$0xff]  ;;  %v284_v18 = vld [vmem:[#allocation2] sm:$0xff] }
  0x30   : > { %v287_v24 = vld [vmem:[#allocation2 + $0x18] sm:$0xff]  ;;  %v285_v30 = vld [vmem:[#allocation2 + $0x8] sm:$0xff] }
  0x31   : > { %v288_v19 = vld [vmem:[#allocation2 + $0x20] sm:$0xff]  ;;  %v289_v31 = vld [vmem:[#allocation2 + $0x28] sm:$0xff] }
  0x32   : > { %v290_v15 = vld [vmem:[#allocation2 + $0x30] sm:$0xff]  ;;  %v291_v25 = vld [vmem:[#allocation2 + $0x38] sm:$0xff] }
  0xed   : > { %v650_v16 = vpop.f32.mrf.mxu0 }
  0xee   : > { %v654_v17 = vpop.f32.mrf.mxu1  ;;  %v392_v20 = vadd.f32 %v650_v16, %v286_v14 }
  0xef   : > { %v396_v21 = vadd.f32 %v654_v17, %v290_v15  ;;  %v359_v22 = vpop.f32.mrf.mxu0 }
  0xf0   : > { %v375_v23 = vpop.f32.mrf.mxu1  ;;  %401 = vst.msk [vmem:[#allocation2 + $0x10] sm:$0xff] %vm275_vm0, %v392_v20  ;;  %v390_v26 = vadd.f32 %v359_v22, %v284_v18 }
  0xf1   : > { %405 = vst.msk [vmem:[#allocation2 + $0x30] sm:$0xff] %vm275_vm0, %v396_v21  ;;  %v394_v27 = vadd.f32 %v375_v23, %v288_v19  ;;  %v651_v28 = vpop.f32.mrf.mxu0 }
  0xf2   : > { %v655_v29 = vpop.f32.mrf.mxu1  ;;  %399 = vst.msk [vmem:[#allocation2] sm:$0xff] %vm275_vm0, %v390_v26  ;;  %v393_v32 = vadd.f32 %v651_v28, %v287_v24 }
  0xf3   : > { %403 = vst.msk [vmem:[#allocation2 + $0x20] sm:$0xff] %vm275_vm0, %v394_v27  ;;  %v397_v33 = vadd.f32 %v655_v29, %v291_v25  ;;  %v362_v34 = vpop.f32.mrf.mxu0 }
  0xf4   : > { %v378_v35 = vpop.f32.mrf.mxu1  ;;  %402 = vst.msk [vmem:[#allocation2 + $0x18] sm:$0xff] %vm275_vm0, %v393_v32  ;;  %v391_v36 = vadd.f32 %v362_v34, %v285_v30 }
  0xf5   : > { %406 = vst.msk [vmem:[#allocation2 + $0x38] sm:$0xff] %vm275_vm0, %v397_v33  ;;  %v395_v37 = vadd.f32 %v378_v35, %v289_v31 }
  0xf6   : > { %400 = vst.msk [vmem:[#allocation2 + $0x8] sm:$0xff] %vm275_vm0, %v391_v36 }
  0xf7   : > { %404 = vst.msk [vmem:[#allocation2 + $0x28] sm:$0xff] %vm275_vm0, %v395_v37  ;;  %v412_v39 = vld [vmem:[#allocation2 + $0x10] sm:$0xff] }
  0xf8   : > { %v416_v40 = vld [vmem:[#allocation2 + $0x30] sm:$0xff]  ;;  %v427_v41 = vadd.f32 %v621_v38, %v412_v39 }
  0xf9   : > { %v431_v42 = vadd.f32 %v621_v38, %v416_v40  ;;  %v410_v43 = vld [vmem:[#allocation2] sm:$0xff] }
  0xfa   : > { %v414_v44 = vld [vmem:[#allocation2 + $0x20] sm:$0xff]  ;;  %v435_v45 = vmax.f32 %v427_v41, 0.0  ;;  %v425_v47 = vadd.f32 %v621_v38, %v410_v43 }
  0xfb   : > { %v439_v46 = vmax.f32 %v431_v42, 0.0  ;;  %v429_v48 = vadd.f32 %v621_v38, %v414_v44  ;;  %v413_v49 = vld [vmem:[#allocation2 + $0x18] sm:$0xff] }
  0xfc   : > { %v417_v50 = vld [vmem:[#allocation2 + $0x38] sm:$0xff]  ;;  %v635_v51 = vpack.c.bf16 %v435_v45, %v435_v45  ;;  %v433_v53 = vmax.f32 %v425_v47, 0.0  ;;  %v428_v55 = vadd.f32 %v621_v38, %v413_v49 }
  0xfd   : > { %v639_v52 = vpack.c.bf16 %v439_v46, %v439_v46  ;;  %v437_v54 = vmax.f32 %v429_v48, 0.0  ;;  %v432_v56 = vadd.f32 %v621_v38, %v417_v50  ;;  %v411_v57 = vld [vmem:[#allocation2 + $0x8] sm:$0xff] }
  0xfe   : > { %v415_v58 = vld [vmem:[#allocation2 + $0x28] sm:$0xff]  ;;  %476 = vst.msk [vmem:[%s930_s6 + $0x8] sm:$0xf] %vm473_vm2, %v635_v51  ;;  %v633_v59 = vpack.c.bf16 %v433_v53, %v433_v53  ;;  %v426_v61 = vadd.f32 %v621_v38, %v411_v57  ;;  %v436_v63 = vmax.f32 %v428_v55, 0.0 }
  0xff   : > { %480 = vst.msk [vmem:[%s930_s6 + $0x18] sm:$0xf] %vm473_vm2, %v639_v52  ;;  %v637_v60 = vpack.c.bf16 %v437_v54, %v437_v54  ;;  %v430_v62 = vadd.f32 %v621_v38, %v415_v58  ;;  %v440_v0 = vmax.f32 %v432_v56, 0.0 }
 0x100   : > { %474 = vst.msk [vmem:[%s930_s6] sm:$0xf] %vm473_vm2, %v633_v59  ;;  %v434_v1 = vmax.f32 %v426_v61, 0.0  ;;  %v636_v3 = vpack.c.bf16 %v436_v63, %v436_v63 }
 0x101   : > { %478 = vst.msk [vmem:[%s930_s6 + $0x10] sm:$0xf] %vm473_vm2, %v637_v60  ;;  %v438_v2 = vmax.f32 %v430_v62, 0.0  ;;  %v640_v4 = vpack.c.bf16 %v440_v0, %v440_v0 }
 0x102   : > { %v634_v5 = vpack.c.bf16 %v434_v1, %v434_v1  ;;  %477 = vst.msk [vmem:[%s930_s6 + $0xc] sm:$0xf] %vm473_vm2, %v636_v3 }
 0x103   : > { %v638_v6 = vpack.c.bf16 %v438_v2, %v438_v2  ;;  %481 = vst.msk [vmem:[%s930_s6 + $0x1c] sm:$0xf] %vm473_vm2, %v640_v4 }
 0x104   : > { %475 = vst.msk [vmem:[%s930_s6 + $0x4] sm:$0xf] %vm473_vm2, %v634_v5 }
 0x105   : > { %479 = vst.msk [vmem:[%s930_s6 + $0x14] sm:$0xf] %vm473_vm2, %v638_v6 }
 0x106 PF: > { %s16_s17 = sadd.s32 1, %s795_s17   ;;  %s974_s12 = smov %s779_s13 }
 0x107   : > { %p13_p8 = scmp.ge.s32.totalorder %s16_s17, 4   ;;  %s975_s13 = smov %s783_s14 }
 0x108   : > { %s976_s14 = smov %s870_s24  ;;  %s977_s15 = smov %s791_s16 }
 0x109   : > { %s978_s16 = smov %s980_s19  ;;  %15 = sbr.rel (!%p13_p8) target bundleno = 4 (0x4), region = 86 }
 0x10e   :  { %510 = vsyncpa [#allocation4], 1 }
 0x10f   :  { %512 = vsyncpa [#allocation4 + $0x1], 1 }

// kernel: bottleneck_pallas.4
= control target key start
LH: loop header
LB: loop body
LE: loop exit
PB: predicated region body
PF: predicated region fallthrough
CT: control target
= control target key end

     0   :  { %s627_s12 = smov 0   ;;  %s629_s13 = smov 0   ;;  %s685_s0 = inlined_call_operand.vmem [shape: bf16[32,72], index: 0, kind: input, shape index: {}]   ;;  %s686_s1 = inlined_call_operand.vmem [shape: bf16[72,8], index: 1, kind: input, shape index: {}]   ;;  %s687_s2 = inlined_call_operand.vmem [shape: f32[1,8], index: 2, kind: input, shape index: {}]   ;;  %s688_s3 = inlined_call_operand.vmem [shape: bf16[32,8], index: 3, kind: output, shape index: {}]  }
   0x1   :  { %s631_s14 = smov 0  }
   0x2 LB: > { %s32_s15 = sadd.s32 1, %s599_s13  ;;  %p510_p0 = scmp.ge.s32.totalorder %s603_s14, 1  ;;  %s603_s14 = sphi %s631_s14, %s13_s14   ;;  %s599_s13 = sphi %s629_s13, %s690_s13   ;;  %s595_s12 = sphi %s627_s12, %s689_s12  }
   0x3   : > { %p34_p1 = scmp.ge.s32.totalorder %s32_s15, 2  ;;  %p188_p2 = scmp.lt.s32.totalorder %s603_s14, 3 }
   0x5   : > { %s692_s15 = smov (%p34_p1, %s32_s15), 0  ;;  %p189_p3 = pnand %p510_p0, %p188_p2 }
   0x6   : > { %s511_s20 = sshll.u32 (!%p189_p3), %s595_s12, 1 }
   0x7   : > { %192 = sbr.rel (%p189_p3) target bundleno = 247 (0xf7), region = 32  ;;  %p230_p4 = scmp.lt.s32.totalorder (!%p189_p3), %s511_s20, 3 }
   0xc   : > { %v575_v0 = vld [vmem:[%s686_s1 + $0x20] ss:$0 sps:$4 sm:$0xff]   ;;  %vm316_vm0 = vcmask 1043456   ;;  %v605_v1 = vmov 0.0   ;;  %vm606_vm1 = vmmov 0   ;;  %v576_v3 = vld [vmem:[%s686_s1 + $0x18] sm:$0xff]  }
   0xd   : > { %535 = vmatprep.subr.bf16.mxu0 %v605_v1  ;;  %v318_v2 = vsel %vm316_vm0, %v575_v0, 0  ;;  %545 = vmatprep.mubr.msk.bf16.mxu0 %vm606_vm1, %v605_v1  ;;  %vm264_vm2 = vcmask 64512   ;;  %s694_s20 = smov (!%p230_p4, %s511_s20), 3  ;;  %v577_v4 = vld [vmem:[%s686_s1 + $0x10] sm:$0xff]   ;;  %v578_v5 = vld [vmem:[%s686_s1 + $0x8] sm:$0xff]   ;;  %v579_v6 = vld [vmem:[%s686_s1] sm:$0xff]  }
   0xe   : > { %536 = vmatpush3.bf16.msra.mxu0 %v318_v2  ;;  %265 = vst.msk [vmem:[#allocation2] sm:$0xff] %vm264_vm2, %v605_v1  ;;  %266 = vst.msk [vmem:[#allocation2 + $0x8] sm:$0xff] %vm264_vm2, %v605_v1  ;;  %s512_s23 = sshll.u32 %s694_s20, 2  ;;  %vm312_vm3 = vcmask 588800   ;;  %v522_v16 = vld [vmem:[%s687_s2] ss:$0 sm:$0xff] }
   0xf   : > { %537 = vmatprep.subr.bf16.mxu0 %v605_v1  ;;  %s236_s26 = scalar_lea.vmem %s685_s0, %s512_s23  ;;  %s257_s8 = scalar_lea.vmem %s688_s3, %s512_s23  ;;  %vm390_vm4 = vcmask 60416  }
  0x10   : > { %v580_v7 = vld [vmem:[%s236_s26] sm:$0xff]  }
  0x12   : > { %538 = vmatpush3.bf16.msra.mxu0 %v576_v3 }
  0x13   : > { %539 = vmatprep.subr.bf16.mxu0 %v605_v1 }
  0x15   : > { %v267_v8 = vld [vmem:[#allocation2] sm:$0xff]  ;;  %v268_v12 = vld [vmem:[#allocation2 + $0x8] sm:$0xff] }
  0x16   : > { %540 = vmatpush3.bf16.msra.mxu0 %v577_v4 }
  0x17   : > { %541 = vmatprep.subr.bf16.mxu0 %v605_v1 }
  0x1a   : > { %542 = vmatpush3.bf16.msra.mxu0 %v578_v5 }
  0x1b   : > { %543 = vmatprep.subr.bf16.mxu0 %v605_v1 }
  0x1e   : > { %544 = vmatpush3.bf16.msra.mxu0 %v579_v6 }
  0x21   : > { %546 = vmatmul.mubr.msk.bf16.vlgmr.msra.gmra.mxu0 %vm312_vm3, %v580_v7 }
  0xe1   : > { %v354_v9 = vpop.f32.mrf.mxu0 }
  0xe2   : > { %v361_v10 = vadd.f32 %v354_v9, %v267_v8 }
  0xe3   : > { %v547_v11 = vpop.f32.mrf.mxu0 }
  0xe4   : > { %364 = vst.msk [vmem:[#allocation2] sm:$0xff] %vm264_vm2, %v361_v10 }
  0xe5   : > { %v357_v13 = vpop.f32.mrf.mxu0 }
  0xe6   : > { %v362_v14 = vadd.f32 %v357_v13, %v268_v12 }
  0xe7   : > { %v548_v15 = vpop.f32.mrf.mxu0 }
  0xe8   : > { %365 = vst.msk [vmem:[#allocation2 + $0x8] sm:$0xff] %vm264_vm2, %v362_v14 }
  0xeb   : > { %v369_v17 = vld [vmem:[#allocation2] sm:$0xff] }
  0xec   : > { %v378_v18 = vadd.f32 %v522_v16, %v369_v17 }
  0xee   : > { %v380_v19 = vmax.f32 %v378_v18, 0.0 }
  0xef   : > { %v370_v20 = vld [vmem:[#allocation2 + $0x8] sm:$0xff] }
  0xf0   : > { %v527_v21 = vpack.c.bf16 %v380_v19, %v380_v19  ;;  %v379_v22 = vadd.f32 %v522_v16, %v370_v20 }
  0xf2   : > { %391 = vst.msk [vmem:[%s257_s8] sm:$0xf] %vm390_vm4, %v527_v21  ;;  %v381_v23 = vmax.f32 %v379_v22, 0.0 }
  0xf4   : > { %v528_v24 = vpack.c.bf16 %v381_v23, %v381_v23 }
  0xf6   : > { %392 = vst.msk [vmem:[%s257_s8 + $0x4] sm:$0xf] %vm390_vm4, %v528_v24 }
  0xf7 PF: > { %s13_s14 = sadd.s32 1, %s603_s14   ;;  %s689_s12 = smov %s599_s13 }
  0xf8   : > { %p10_p5 = scmp.ge.s32.totalorder %s13_s14, 4   ;;  %s690_s13 = smov %s692_s15 }
  0xfa   :  { %12 = sbr.rel (!%p10_p5) target bundleno = 2 (0x2), region = 76 }

// kernel: bottleneck_pallas.5
= control target key start
LH: loop header
LB: loop body
LE: loop exit
PB: predicated region body
PF: predicated region fallthrough
CT: control target
= control target key end

     0   :  { %10 = vsyncpa [#allocation3], 0  ;;  %s918_s0 = inlined_call_operand.vmem [shape: bf16[32,8], index: 0, kind: input, shape index: {}]   ;;  %s919_s1 = inlined_call_operand.vmem [shape: bf16[8,32], index: 1, kind: input, shape index: {}]   ;;  %s920_s2 = inlined_call_operand.vmem [shape: f32[32,16], index: 2, kind: input, shape index: {}]   ;;  %s921_s3 = inlined_call_operand.vmem [shape: bf16[16,32], index: 3, kind: input, shape index: {}]   ;;  %s922_s4 = inlined_call_operand.vmem [shape: f32[1,32], index: 4, kind: input, shape index: {}]   ;;  %s923_s5 = inlined_call_operand.hbm [shape: f32[32,32], index: 5, kind: output, shape index: {}]  }
   0x1   :  { %12 = vsyncpa [#allocation3 + $0x1], 0  ;;  %s793_s18 = smov 0   ;;  %s795_s19 = smov 0  }
   0x2   :  { %s797_s20 = smov 0   ;;  %s799_s21 = smov 0  }
   0x3   :  { %s801_s22 = smov 0   ;;  %s803_s23 = smov 0  }
   0x4 LB: > { %s579_s24 = sadd.s32 4294967295, %s756_s23   ;;  %s580_s25 = sadd.s32 4294967294, %s756_s23   ;;  %s756_s23 = sphi %s803_s23, %s18_s23   ;;  %s752_s22 = sphi %s801_s22, %s930_s22   ;;  %s748_s21 = sphi %s799_s21, %s929_s21   ;;  %s744_s20 = sphi %s797_s20, %s928_s20   ;;  %s740_s19 = sphi %s795_s19, %s927_s19   ;;  %s736_s18 = sphi %s793_s18, %s926_s18  }
   0x5   : > { %s30_s26 = sadd.s32 1, %s752_s22  ;;  %s169_s27 = sadd.s32 1, %s744_s20 }
   0x6   : > { %p32_p0 = scmp.ge.s32.totalorder %s30_s26, 2  ;;  %p179_p1 = scmp.ne.s32.totalorder %s744_s20, %s740_s19 }
   0x7   : > { %p180_p2 = scmp.eq.s32.totalorder %s579_s24, 1  ;;  %p185_p3 = scmp.ne.s32.totalorder %s740_s19, %s736_s18 }
   0x8   : > { %s932_s26 = smov (%p32_p0, %s30_s26), 0  ;;  %p186_p5 = scmp.eq.s32.totalorder %s580_s25, 1 }
   0x9   : > { %p833_p4 = por %p180_p2, %p179_p1  ;;  %s164_s29 = ssub.s32 %s752_s22, %s932_s26 }
   0xa   : > { %p586_p6 = scmp.ge.s32.totalorder %s756_s23, 1  ;;  %p167_p7 = scmp.eq.s32.totalorder %s164_s29, 0 }
   0xb   : > { %p840_p8 = por %p186_p5, %p185_p3  ;;  %p242_p9 = scmp.lt.s32.totalorder %s756_s23, 3 }
   0xc   : > { %s846_s6 = scalar_select %p167_p7, %s744_s20, %s169_s27  }
   0xd   : > { %p243_p10 = pnand %p586_p6, %p242_p9 }
   0xe   : > { %s588_s11 = sshll.u32 (!%p243_p10), %s748_s21, 1  ;;  %s283_s27 = sand.u32 (!%p243_p10), 1, %s740_s19  }
   0xf   : > { %246 = sbr.rel (%p243_p10) target bundleno = 243 (0xf3), region = 40  ;;  %p287_p11 = scmp.lt.s32.totalorder (!%p243_p10), %s588_s11, 3 }
  0x10   : > { %s587_s8 = sshll.u32 (!%p243_p10), %s283_s27, 4  ;;  %s602_s9 = sshll.u32 (!%p243_p10), %s748_s21, 8 }
  0x11   : > { %s285_s10 = scalar_lea.vmem (!%p243_p10), [#allocation2], %s587_s8  ;;  %s869_s14 = scalar_lea.hbm (!%p243_p10), %s923_s5, %s602_s9 }
  0x12   : > { %s873_s15 = scalar_lea.sflag (!%p243_p10), [#allocation3], %s283_s27 }
  0x14   : > { %v678_v0 = vld [vmem:[%s921_s3] sm:$0xff]   ;;  %v758_v1 = vmov 0.0   ;;  %vm379_vm0 = vcmask 1043456   ;;  %vm759_vm1 = vmmov 0   ;;  %s934_s11 = smov (!%p287_p11, %s588_s11), 3  ;;  %vm325_vm2 = vcmask 130048  }
  0x15   : > { %607 = vmatprep.subr.bf16.mxu0 %v758_v1  ;;  %613 = vmatprep.subr.bf16.mxu1 %v758_v1  ;;  %v313_v2 = vld [vmem:[%s919_s1] sm:$0xf]  ;;  %s591_s12 = sshll.u32 %s934_s11, 3  ;;  %s589_s13 = sshll.u32 %s934_s11, 2  ;;  %vm375_vm3 = vcmask 64512   ;;  %vm435_vm4 = vcmask 261120  }
  0x16   : > { %608 = vmatpush3.bf16.msra.mxu0 %v678_v0  ;;  %v381_v3 = vsel %vm379_vm0, %v313_v2, 0  ;;  %609 = vmatprep.mubr.msk.bf16.mxu0 %vm759_vm1, %v758_v1  ;;  %s300_s16 = scalar_lea.vmem %s920_s2, %s591_s12  ;;  %s290_s25 = scalar_lea.vmem %s918_s0, %s589_s13  ;;  %v596_v10 = vld [vmem:[%s922_s4] ss:$0 sm:$0xff] }
  0x17   : > { %614 = vmatpush3.bf16.msra.mxu1 %v381_v3  ;;  %615 = vmatprep.mubr.msk.bf16.mxu1 %vm759_vm1, %v758_v1  ;;  %v314_v4 = vld [vmem:[%s300_s16] sm:$0xff]  ;;  %v315_v5 = vld [vmem:[%s300_s16 + $0x8] sm:$0xff]  ;;  %s453_s11 = sshll.u32 %s285_s10, 4  ;;  %s760_s16 = smov [#allocation2]   ;;  %s871_s11 = int_to_ptr.vmem [resolvable:$true] %s453_s11 }
  0x18   : > { %v316_v6 = vpack.c.bf16 %v315_v5, %v314_v4  ;;  %v679_v7 = vld [vmem:[%s290_s25] sm:$0xff]   ;;  %s680_s21 = scalar_lea.vmem %s871_s11, 256  ;;  %s684_s17 = sshll.u32 %s760_s16, 4  ;;  %s685_s17 = int_to_ptr.vmem [resolvable:$false] %s684_s17 }
  0x19   : > { %p681_p12 = scmp.ne.s32.totalorder %s871_s11, %s680_s21  ;;  %s686_s24 = scalar_lea.vmem %s685_s17, 512 }
  0x1a   : > { %610 = vmatmul.mubr.msk.bf16.vlgmr.msra.gmra.mxu0 %vm325_vm2, %v316_v6  ;;  %616 = vmatmul.mubr.msk.bf16.vlgmr.msra.gmra.mxu1 %vm375_vm3, %v679_v7  ;;  %p687_p1 = scmp.lt.s32.totalorder %s871_s11, %s685_s17  ;;  %p688_p2 = scmp.lt.s32.totalorder %s686_s24, %s680_s21 }
  0x1b   : > { %p682_p13 = pnand %p681_p12, %p833_p4 }
  0x1c   : > { %p689_p3 = por %p688_p2, %p687_p1 }
  0x1d   : > { %p683_p0 = pneg %p682_p13 }
  0x1f   : > { %p690_p5 = pnand %p689_p3, %p683_p0 }
  0xda   : > { %v363_v8 = vpop.f32.mrf.mxu0  ;;  %v417_v9 = vpop.f32.mrf.mxu1 }
  0xdb   : > { %v418_v11 = vadd.f32 %v417_v9, %v363_v8 }
  0xdc   : > { %v611_v12 = vpop.f32.mrf.mxu0  ;;  %v617_v13 = vpop.f32.mrf.mxu1 }
  0xdd   : > { %v431_v14 = vadd.f32 %v596_v10, %v418_v11 }
  0xde   : > { %v366_v15 = vpop.f32.mrf.mxu0  ;;  %v420_v16 = vpop.f32.mrf.mxu1 }
  0xdf   : > { %v433_v17 = vmax.f32 %v431_v14, 0.0  ;;  %v421_v18 = vadd.f32 %v420_v16, %v366_v15 }
  0xe0   : > { %v612_v19 = vpop.f32.mrf.mxu0  ;;  %v618_v20 = vpop.f32.mrf.mxu1 }
  0xe1   : > { %436 = vst.msk [vmem:[%s285_s10] sm:$0xff] %vm435_vm4, %v433_v17  ;;  %v432_v21 = vadd.f32 %v596_v10, %v421_v18 }
  0xe3   : > { %v434_v22 = vmax.f32 %v432_v21, 0.0 }
  0xe5   : > { %437 = vst.msk [vmem:[%s285_s10 + $0x8] sm:$0xff] %vm435_vm4, %v434_v22 }
  0xe6   : > { %693 = shalt.err (!%p690_p5)
}
  0xe7   : > { %s694_s25 = scalar_lea.hbm %s869_s14, 256  ;;  %s698_s7 = scalar_lea.hbm %s923_s5, 512 }
  0xe8   : > { %p695_p6 = scmp.ne.s32.totalorder %s869_s14, %s694_s25  ;;  %p699_p10 = scmp.lt.s32.totalorder %s869_s14, %s923_s5 }
  0xe9   : > { %p700_p11 = scmp.lt.s32.totalorder %s698_s7, %s694_s25 }
  0xea   : > { %p696_p7 = pnand %p695_p6, %p833_p4 }
  0xeb   : > { %p701_p12 = por %p700_p11, %p699_p10 }
  0xec   : > { %p697_p9 = pneg %p696_p7 }
  0xee   : > { %p702_p13 = pnand %p701_p12, %p697_p9 }
  0xf0   : > { %705 = shalt.err (!%p702_p13)
}
  0xf1   : > { %s761_s10 = smov 128   ;;  %s762_s12 = smov 8  }
  0xf2   : > { %619 = dma.vmem_to_hbm [thread:$0]  (%p833_p4), %s871_s11, 256, %s869_s14, %s873_s15, %s761_s10, %s761_s10, %s762_s12  }
  0xf3 PF: > { %p625_p0 = scmp.ge.s32.totalorder %s756_s23, 2  ;;  %s468_s13 = sand.u32 1, %s736_s18  }
  0xf4   : > { %s469_s21 = scalar_lea.sflag [#allocation3], %s468_s13 }
  0xf5   : > { %p622_p1 = pnand %p625_p0, %p840_p8 }
  0xf7   : > { %p623_p2 = pneg %p622_p1 }
  0xf9   : > { %731 = dma.done.wait (%p623_p2), %s469_s21, 256  }
  0xfa   : > { %733 = vsyncadd (%p623_p2), %s469_s21, 4294967040  ;;  %s18_s23 = sadd.s32 1, %s756_s23   ;;  %s926_s18 = smov %s740_s19 }
  0xfb   : > { %p15_p3 = scmp.ge.s32.totalorder %s18_s23, 4   ;;  %s927_s19 = smov %s744_s20 }
  0xfc   : > { %s928_s20 = smov %s846_s6  ;;  %s929_s21 = smov %s752_s22 }
  0xfd   : > { %s930_s22 = smov %s932_s26  ;;  %17 = sbr.rel (!%p15_p3) target bundleno = 4 (0x4), region = 87 }
 0x102   :  { %474 = vsyncpa [#allocation3], 1 }
 0x103   :  { %476 = vsyncpa [#allocation3 + $0x1], 1 }

</bundles_post_ra>
